<compile_context>
chip_gen: v7x
topology: tpu7x:2x2x1
jax: 0.10.0
libtpu: 0.0.40
codegen_flags: <defaults>
</compile_context>

<pallas_src>
import functools

import jax
import jax.numpy as jnp
from jax.experimental import pallas as pl
from jax.experimental.pallas import tpu as pltpu


def _combined_loss_kernel(logits_ref, tgt_ref, ce_ref, inter_ref, card_ref,
                          ce_acc, inter_acc, card_acc):
    """One (batch b, pixel-tile i) grid step.

    logits_ref: [C, tn]  input dtype (batch dim squeezed)
    tgt_ref:    [1, tn]  int32
    ce_ref:     [1, 1]   f32  per-batch output (sum of per-pixel NLL)
    inter_ref:  [C, 1]   f32  per-batch output (dice intersection per class)
    card_ref:   [C, 1]   f32  per-batch output (dice cardinality per class)
    ce_acc:     [1, tn]  f32  lane-dense VMEM accumulator
    inter_acc:  [C, tn]  f32  lane-dense VMEM accumulator
    card_acc:   [C, tn]  f32  lane-dense VMEM accumulator
    """
    i = pl.program_id(1)

    @pl.when(i == 0)
    def _():
        ce_acc[...] = jnp.zeros_like(ce_acc)
        inter_acc[...] = jnp.zeros_like(inter_acc)
        card_acc[...] = jnp.zeros_like(card_acc)

    x = logits_ref[...].astype(jnp.float32)                  # [C, tn]
    t = tgt_ref[...]                                         # [1, tn] int32

    # numerically-stable softmax over the class (sublane) axis
    m = jnp.max(x, axis=0, keepdims=True)                    # [1, tn]
    e = jnp.exp(x - m)                                       # [C, tn]
    s = jnp.sum(e, axis=0, keepdims=True)                    # [1, tn]
    inv_s = pl.reciprocal(s, approx=False)                   # 1 recip per pixel
    probs = e * inv_s                                        # VPU multiplies

    # one-hot of the target class
    cls = jax.lax.broadcasted_iota(jnp.int32, x.shape, 0)    # [C, tn]
    onehot = (cls == t).astype(jnp.float32)                  # [C, tn]

    # cross-entropy: -log_softmax at the target class (kept lane-dense)
    x_t = jnp.sum(x * onehot, axis=0, keepdims=True)         # [1, tn]
    nll = -(x_t - m - jnp.log(s))                            # [1, tn]

    # deferred lane reductions: accumulate lane-dense partials (VPU adds only)
    ce_acc[...] = ce_acc[...] + nll
    inter_acc[...] = inter_acc[...] + probs * onehot
    card_acc[...] = card_acc[...] + probs + onehot

    # single cross-lane (XLU) reduce + narrow store, once per batch slice
    @pl.when(i == pl.num_programs(1) - 1)
    def _():
        ce_ref[...] = jnp.sum(ce_acc[...], axis=1, keepdims=True)
        inter_ref[...] = jnp.sum(inter_acc[...], axis=1, keepdims=True)
        card_ref[...] = jnp.sum(card_acc[...], axis=1, keepdims=True)


def _pick_tile_n(hw, max_tile):
    """Largest lane-friendly pixel tile that divides H*W and is <= max_tile."""
    if hw <= max_tile:
        return hw
    t = (max_tile // 128) * 128
    while t >= 128:
        if hw % t == 0:
            return t
        t -= 128
    # no 128-multiple divisor of hw; fall back to any divisor (slower stores)
    t = max_tile
    while hw % t != 0:
        t -= 1
    return t


@functools.partial(jax.jit, static_argnames=("smooth", "tile_n"))
def combined_loss(logits, targets, smooth=1e-6, tile_n=2048):
    """logits: [B, C, H, W] float, targets: [B, H, W] int -> scalar loss."""
    B, C, H, W = logits.shape
    HW = H * W
    N = B * HW
    tn = _pick_tile_n(HW, tile_n)

    # Transpose-free: NCHW is contiguous as (B, C, HW); no wrapper upcast.
    logits_r = logits.reshape(B, C, HW)
    tgt = targets.reshape(B, 1, HW).astype(jnp.int32)

    itemsize = jnp.dtype(logits.dtype).itemsize
    in_bytes = C * tn * itemsize + tn * 4            # one input buffer set
    scratch_bytes = (2 * C + 1) * tn * 4             # lane-dense accumulators
    needed = 2 * in_bytes + scratch_bytes            # double-buffered inputs
    vmem_limit = int(min(max(2 * needed + (4 << 20), 8 << 20), 48 << 20))

    cost = pl.CostEstimate(
        flops=int(10 * C * N),
        transcendentals=int((C + 1) * N),
        bytes_accessed=int(C * N * itemsize + N * 4 + (2 * C + 1) * B * 4),
    )

    ce_out, inter_out, card_out = pl.pallas_call(
        _combined_loss_kernel,
        out_shape=(
            jax.ShapeDtypeStruct((B, 1, 1), jnp.float32),
            jax.ShapeDtypeStruct((B, C, 1), jnp.float32),
            jax.ShapeDtypeStruct((B, C, 1), jnp.float32),
        ),
        grid_spec=pltpu.PrefetchScalarGridSpec(
            num_scalar_prefetch=0,
            grid=(B, HW // tn),
            in_specs=[
                pl.BlockSpec((None, C, tn), lambda b, i: (b, 0, i)),
                pl.BlockSpec((None, 1, tn), lambda b, i: (b, 0, i)),
            ],
            out_specs=[
                pl.BlockSpec((None, 1, 1), lambda b, i: (b, 0, 0)),
                pl.BlockSpec((None, C, 1), lambda b, i: (b, 0, 0)),
                pl.BlockSpec((None, C, 1), lambda b, i: (b, 0, 0)),
            ],
            scratch_shapes=[
                pltpu.VMEM((1, tn), jnp.float32),
                pltpu.VMEM((C, tn), jnp.float32),
                pltpu.VMEM((C, tn), jnp.float32),
            ],
        ),
        compiler_params=pltpu.CompilerParams(
            dimension_semantics=("parallel", "arbitrary"),
            vmem_limit_bytes=vmem_limit,
        ),
        cost_estimate=cost,
    )(logits_r, tgt)

    # O(B*C) finalization glue in plain JAX
    ce_loss = jnp.sum(ce_out) / N                    # mean NLL (weight=None)
    inter = jnp.sum(inter_out[:, :, 0], axis=0)      # (C,)
    card = jnp.sum(card_out[:, :, 0], axis=0)        # (C,)
    dice = (2.0 * inter + smooth) / (card + smooth)
    dice_loss = 1.0 - jnp.mean(dice)
    return ce_loss + dice_loss


def _reference_combined_loss(logits, targets, smooth=1e-6):
    """Pure-JAX reference mirroring the PyTorch module semantics."""
    probs = jax.nn.softmax(logits, axis=1)                        # [B,C,H,W]
    onehot = jax.nn.one_hot(targets, logits.shape[1], dtype=jnp.float32)
    onehot = jnp.transpose(onehot, (0, 3, 1, 2))                  # [B,C,H,W]
    inter = jnp.sum(probs * onehot, axis=(0, 2, 3))
    card = jnp.sum(probs + onehot, axis=(0, 2, 3))
    dice = (2.0 * inter + smooth) / (card + smooth)
    dice_loss = 1.0 - jnp.mean(dice)
    logp = jax.nn.log_softmax(logits, axis=1)
    ce = -jnp.mean(jnp.sum(logp * onehot, axis=1))
    return ce + dice_loss


if __name__ == "__main__":
    B, C, H, W = 2, 4, 16, 16
    key = jax.random.PRNGKey(0)
    k_logits, k_tgt = jax.random.split(key)
    logits = jax.random.normal(k_logits, (B, C, H, W), dtype=jnp.float32)
    targets = jax.random.randint(k_tgt, (B, H, W), 0, C, dtype=jnp.int32)

    loss = combined_loss(logits, targets)
    loss = jax.block_until_ready(loss)

    ref = jax.block_until_ready(_reference_combined_loss(logits, targets))
    assert jnp.allclose(loss, ref, atol=1e-5, rtol=1e-5), (loss, ref)

    print("KERNEL_OK")
</pallas_src>

<mosaic_0001>
module attributes {stable_mosaic.version = 11 : i64} {
  func.func @_combined_loss_kernel(%arg0: i32, %arg1: i32, %arg2: memref<1x4x256xf32, #tpu.memory_space<vmem>>, %arg3: memref<1x1x256xi32, #tpu.memory_space<vmem>>, %arg4: memref<1x1x1xf32, #tpu.memory_space<vmem>>, %arg5: memref<1x4x1xf32, #tpu.memory_space<vmem>>, %arg6: memref<1x4x1xf32, #tpu.memory_space<vmem>>, %arg7: memref<1x256xf32, #tpu.memory_space<vmem>>, %arg8: memref<4x256xf32, #tpu.memory_space<vmem>>, %arg9: memref<4x256xf32, #tpu.memory_space<vmem>>) attributes {dimension_semantics = [#tpu.dimension_semantics<parallel>, #tpu.dimension_semantics<arbitrary>], iteration_bounds = array<i64: 2, 1>, scalar_prefetch = 0 : i64, scratch_operands = 3 : i64, tpu.core_type = #tpu.core_type<tc>, window_params = [{transform_indices = @transform_0, window_bounds = array<i64: 1, 4, 256>}, {transform_indices = @transform_1, window_bounds = array<i64: 1, 1, 256>}, {transform_indices = @transform_2, window_bounds = array<i64: 1, 1, 1>}, {transform_indices = @transform_3, window_bounds = array<i64: 1, 4, 1>}, {transform_indices = @transform_4, window_bounds = array<i64: 1, 4, 1>}]} {
    %c0_i32 = arith.constant 0 : i32
    %0 = arith.cmpi eq, %arg1, %c0_i32 : i32
    %1 = arith.extui %0 : i1 to i32
    %c0_i32_0 = arith.constant 0 : i32
    %2 = arith.cmpi ne, %1, %c0_i32_0 : i32
    scf.if %2 {
      %cst_23 = arith.constant 0.000000e+00 : f32
      %44 = vector.broadcast %cst_23 : f32 to vector<1x256xf32>
      %c0_24 = arith.constant 0 : index
      %c0_25 = arith.constant 0 : index
      %45 = vector.load %arg7[%c0_24, %c0_25] : memref<1x256xf32, #tpu.memory_space<vmem>>, vector<1x256xf32>
      tpu.vector_store %arg7[%c0_24, %c0_25], %44 {strides = array<i32>} : memref<1x256xf32, #tpu.memory_space<vmem>>, vector<1x256xf32>,
      %cst_26 = arith.constant 0.000000e+00 : f32
      %46 = vector.broadcast %cst_26 : f32 to vector<4x256xf32>
      %c0_27 = arith.constant 0 : index
      %c0_28 = arith.constant 0 : index
      %47 = vector.load %arg8[%c0_27, %c0_28] : memref<4x256xf32, #tpu.memory_space<vmem>>, vector<4x256xf32>
      tpu.vector_store %arg8[%c0_27, %c0_28], %46 {strides = array<i32>} : memref<4x256xf32, #tpu.memory_space<vmem>>, vector<4x256xf32>,
      %cst_29 = arith.constant 0.000000e+00 : f32
      %48 = vector.broadcast %cst_29 : f32 to vector<4x256xf32>
      %c0_30 = arith.constant 0 : index
      %c0_31 = arith.constant 0 : index
      %49 = vector.load %arg9[%c0_30, %c0_31] : memref<4x256xf32, #tpu.memory_space<vmem>>, vector<4x256xf32>
      tpu.vector_store %arg9[%c0_30, %c0_31], %48 {strides = array<i32>} : memref<4x256xf32, #tpu.memory_space<vmem>>, vector<4x256xf32>,
    } else {
    }
    %c0 = arith.constant 0 : index
    %c0_1 = arith.constant 0 : index
    %c0_2 = arith.constant 0 : index
    %3 = vector.load %arg2[%c0, %c0_1, %c0_2] : memref<1x4x256xf32, #tpu.memory_space<vmem>>, vector<1x4x256xf32>
    %4 = vector.shape_cast %3 : vector<1x4x256xf32> to vector<4x256xf32>
    %c0_3 = arith.constant 0 : index
    %c0_4 = arith.constant 0 : index
    %c0_5 = arith.constant 0 : index
    %5 = vector.load %arg3[%c0_3, %c0_4, %c0_5] : memref<1x1x256xi32, #tpu.memory_space<vmem>>, vector<1x1x256xi32>
    %6 = vector.shape_cast %5 : vector<1x1x256xi32> to vector<1x256xi32>
    %cst = arith.constant dense<0xFF800000> : vector<256xf32>
    %7 = vector.multi_reduction <maximumf>, %4, %cst [0] : vector<4x256xf32> to vector<256xf32>
    %8 = vector.shape_cast %7 : vector<256xf32> to vector<1x256xf32>
    %9 = vector.broadcast %8 : vector<1x256xf32> to vector<4x256xf32>
    %10 = arith.subf %4, %9 : vector<4x256xf32>
    %11 = math.exp %10 : vector<4x256xf32>
    %cst_6 = arith.constant dense<0.000000e+00> : vector<256xf32>
    %12 = vector.multi_reduction <add>, %11, %cst_6 [0] : vector<4x256xf32> to vector<256xf32>
    %13 = vector.shape_cast %12 : vector<256xf32> to vector<1x256xf32>
    %14 = tpu.reciprocal %13 : vector<1x256xf32> -> vector<1x256xf32>
    %15 = vector.broadcast %14 : vector<1x256xf32> to vector<4x256xf32>
    %16 = arith.mulf %11, %15 : vector<4x256xf32>
    %17 = tpu.iota {dimensions = array<i32: 0>} : vector<4x256xi32>
    %18 = vector.broadcast %6 : vector<1x256xi32> to vector<4x256xi32>
    %19 = arith.cmpi eq, %17, %18 : vector<4x256xi32>
    %20 = arith.extui %19 : vector<4x256xi1> to vector<4x256xi32>
    %21 = arith.sitofp %20 : vector<4x256xi32> to vector<4x256xf32>
    %22 = arith.mulf %4, %21 : vector<4x256xf32>
    %cst_7 = arith.constant dense<0.000000e+00> : vector<256xf32>
    %23 = vector.multi_reduction <add>, %22, %cst_7 [0] : vector<4x256xf32> to vector<256xf32>
    %24 = vector.shape_cast %23 : vector<256xf32> to vector<1x256xf32>
    %25 = arith.subf %24, %8 : vector<1x256xf32>
    %26 = math.log %13 : vector<1x256xf32>
    %27 = arith.subf %25, %26 : vector<1x256xf32>
    %cst_8 = arith.constant 0.000000e+00 : f32
    %28 = vector.broadcast %cst_8 : f32 to vector<1x256xf32>
    %29 = arith.subf %28, %27 : vector<1x256xf32>
    %c0_9 = arith.constant 0 : index
    %c0_10 = arith.constant 0 : index
    %30 = vector.load %arg7[%c0_9, %c0_10] : memref<1x256xf32, #tpu.memory_space<vmem>>, vector<1x256xf32>
    %31 = arith.addf %30, %29 : vector<1x256xf32>
    %c0_11 = arith.constant 0 : index
    %c0_12 = arith.constant 0 : index
    %32 = vector.load %arg7[%c0_11, %c0_12] : memref<1x256xf32, #tpu.memory_space<vmem>>, vector<1x256xf32>
    tpu.vector_store %arg7[%c0_11, %c0_12], %31 {strides = array<i32>} : memref<1x256xf32, #tpu.memory_space<vmem>>, vector<1x256xf32>,
    %c0_13 = arith.constant 0 : index
    %c0_14 = arith.constant 0 : index
    %33 = vector.load %arg8[%c0_13, %c0_14] : memref<4x256xf32, #tpu.memory_space<vmem>>, vector<4x256xf32>
    %34 = arith.mulf %16, %21 : vector<4x256xf32>
    %35 = arith.addf %33, %34 : vector<4x256xf32>
    %c0_15 = arith.constant 0 : index
    %c0_16 = arith.constant 0 : index
    %36 = vector.load %arg8[%c0_15, %c0_16] : memref<4x256xf32, #tpu.memory_space<vmem>>, vector<4x256xf32>
    tpu.vector_store %arg8[%c0_15, %c0_16], %35 {strides = array<i32>} : memref<4x256xf32, #tpu.memory_space<vmem>>, vector<4x256xf32>,
    %c0_17 = arith.constant 0 : index
    %c0_18 = arith.constant 0 : index
    %37 = vector.load %arg9[%c0_17, %c0_18] : memref<4x256xf32, #tpu.memory_space<vmem>>, vector<4x256xf32>
    %38 = arith.addf %37, %16 : vector<4x256xf32>
    %39 = arith.addf %38, %21 : vector<4x256xf32>
    %c0_19 = arith.constant 0 : index
    %c0_20 = arith.constant 0 : index
    %40 = vector.load %arg9[%c0_19, %c0_20] : memref<4x256xf32, #tpu.memory_space<vmem>>, vector<4x256xf32>
    tpu.vector_store %arg9[%c0_19, %c0_20], %39 {strides = array<i32>} : memref<4x256xf32, #tpu.memory_space<vmem>>, vector<4x256xf32>,
    %c0_i32_21 = arith.constant 0 : i32
    %41 = arith.cmpi eq, %arg1, %c0_i32_21 : i32
    %42 = arith.extui %41 : i1 to i32
    %c0_i32_22 = arith.constant 0 : i32
    %43 = arith.cmpi ne, %42, %c0_i32_22 : i32
    scf.if %43 {
      %c0_23 = arith.constant 0 : index
      %c0_24 = arith.constant 0 : index
      %44 = vector.load %arg7[%c0_23, %c0_24] : memref<1x256xf32, #tpu.memory_space<vmem>>, vector<1x256xf32>
      %cst_25 = arith.constant dense<0.000000e+00> : vector<1xf32>
      %45 = vector.multi_reduction <add>, %44, %cst_25 [1] : vector<1x256xf32> to vector<1xf32>
      %46 = vector.shape_cast %45 : vector<1xf32> to vector<1x1xf32>
      %c0_26 = arith.constant 0 : index
      %c0_27 = arith.constant 0 : index
      %c0_28 = arith.constant 0 : index
      %47 = vector.load %arg4[%c0_26, %c0_27, %c0_28] : memref<1x1x1xf32, #tpu.memory_space<vmem>>, vector<1x1x1xf32>
      %48 = vector.shape_cast %47 : vector<1x1x1xf32> to vector<1x1xf32>
      %49 = vector.shape_cast %46 : vector<1x1xf32> to vector<1x1x1xf32>
      tpu.vector_store %arg4[%c0_26, %c0_27, %c0_28], %49 {strides = array<i32>} : memref<1x1x1xf32, #tpu.memory_space<vmem>>, vector<1x1x1xf32>,
      %c0_29 = arith.constant 0 : index
      %c0_30 = arith.constant 0 : index
      %50 = vector.load %arg8[%c0_29, %c0_30] : memref<4x256xf32, #tpu.memory_space<vmem>>, vector<4x256xf32>
      %cst_31 = arith.constant dense<0.000000e+00> : vector<4xf32>
      %51 = vector.multi_reduction <add>, %50, %cst_31 [1] : vector<4x256xf32> to vector<4xf32>
      %52 = vector.shape_cast %51 : vector<4xf32> to vector<4x1xf32>
      %c0_32 = arith.constant 0 : index
      %c0_33 = arith.constant 0 : index
      %c0_34 = arith.constant 0 : index
      %53 = vector.load %arg5[%c0_32, %c0_33, %c0_34] : memref<1x4x1xf32, #tpu.memory_space<vmem>>, vector<1x4x1xf32>
      %54 = vector.shape_cast %53 : vector<1x4x1xf32> to vector<4x1xf32>
      %55 = vector.shape_cast %52 : vector<4x1xf32> to vector<1x4x1xf32>
      tpu.vector_store %arg5[%c0_32, %c0_33, %c0_34], %55 {strides = array<i32>} : memref<1x4x1xf32, #tpu.memory_space<vmem>>, vector<1x4x1xf32>,
      %c0_35 = arith.constant 0 : index
      %c0_36 = arith.constant 0 : index
      %56 = vector.load %arg9[%c0_35, %c0_36] : memref<4x256xf32, #tpu.memory_space<vmem>>, vector<4x256xf32>
      %cst_37 = arith.constant dense<0.000000e+00> : vector<4xf32>
      %57 = vector.multi_reduction <add>, %56, %cst_37 [1] : vector<4x256xf32> to vector<4xf32>
      %58 = vector.shape_cast %57 : vector<4xf32> to vector<4x1xf32>
      %c0_38 = arith.constant 0 : index
      %c0_39 = arith.constant 0 : index
      %c0_40 = arith.constant 0 : index
      %59 = vector.load %arg6[%c0_38, %c0_39, %c0_40] : memref<1x4x1xf32, #tpu.memory_space<vmem>>, vector<1x4x1xf32>
      %60 = vector.shape_cast %59 : vector<1x4x1xf32> to vector<4x1xf32>
      %61 = vector.shape_cast %58 : vector<4x1xf32> to vector<1x4x1xf32>
      tpu.vector_store %arg6[%c0_38, %c0_39, %c0_40], %61 {strides = array<i32>} : memref<1x4x1xf32, #tpu.memory_space<vmem>>, vector<1x4x1xf32>,
    } else {
    }
    return
  }
  func.func @transform_0(%arg0: i32, %arg1: i32) -> (i32, i32, i32) {
    %c0_i32 = arith.constant 0 : i32
    %c0_i32_0 = arith.constant 0 : i32
    return %arg0, %c0_i32, %arg1 : i32, i32, i32
  }
  func.func @transform_1(%arg0: i32, %arg1: i32) -> (i32, i32, i32) {
    %c0_i32 = arith.constant 0 : i32
    %c0_i32_0 = arith.constant 0 : i32
    return %arg0, %c0_i32, %arg1 : i32, i32, i32
  }
  func.func @transform_2(%arg0: i32, %arg1: i32) -> (i32, i32, i32) {
    %c0_i32 = arith.constant 0 : i32
    %c0_i32_0 = arith.constant 0 : i32
    %c0_i32_1 = arith.constant 0 : i32
    return %arg0, %c0_i32, %c0_i32_0 : i32, i32, i32
  }
  func.func @transform_3(%arg0: i32, %arg1: i32) -> (i32, i32, i32) {
    %c0_i32 = arith.constant 0 : i32
    %c0_i32_0 = arith.constant 0 : i32
    %c0_i32_1 = arith.constant 0 : i32
    return %arg0, %c0_i32, %c0_i32_0 : i32, i32, i32
  }
  func.func @transform_4(%arg0: i32, %arg1: i32) -> (i32, i32, i32) {
    %c0_i32 = arith.constant 0 : i32
    %c0_i32_0 = arith.constant 0 : i32
    %c0_i32_1 = arith.constant 0 : i32
    return %arg0, %c0_i32, %c0_i32_0 : i32, i32, i32
  }
}

</mosaic_0001>

<bundles_post_ra>
// kernel: combined_loss.1
= control target key start
LH: loop header
LB: loop body
LE: loop exit
PB: predicated region body
PF: predicated region fallthrough
CT: control target
= control target key end

     0   :  { %s704_s15 = smov 0   ;;  %s706_s16 = smov 0   ;;  %s790_s0 = inlined_call_operand.vmem [shape: f32[2,4,256], index: 0, kind: input, shape index: {}]   ;;  %s791_s1 = inlined_call_operand.vmem [shape: s32[2,1,256], index: 1, kind: input, shape index: {}]   ;;  %s792_s2 = inlined_call_operand.vmem [shape: f32[2,1,1], index: 2, kind: output, shape index: {0}]   ;;  %s793_s3 = inlined_call_operand.vmem [shape: f32[2,4,1], index: 3, kind: output, shape index: {1}]   ;;  %s794_s4 = inlined_call_operand.vmem [shape: f32[2,4,1], index: 4, kind: output, shape index: {2}]  }
   0x1   :  { %s708_s17 = smov 0  }
   0x2 LB: > { %s27_s18 = sadd.s32 1, %s671_s16  ;;  %p605_p0 = scmp.ge.s32.totalorder %s675_s17, 1  ;;  %s675_s17 = sphi %s708_s17, %s15_s17   ;;  %s671_s16 = sphi %s706_s16, %s798_s16   ;;  %s667_s15 = sphi %s704_s15, %s797_s15  }
   0x3   : > { %p29_p1 = scmp.ge.s32.totalorder %s27_s18, 2  ;;  %p202_p2 = scmp.lt.s32.totalorder %s675_s17, 3 }
   0x5   : > { %s800_s18 = smov (%p29_p1, %s27_s18), 0  ;;  %p203_p3 = pnand %p605_p0, %p202_p2 }
   0x6   : > { %p247_p4 = scmp.lt.s32.totalorder (!%p203_p3), %s667_s15, 1  ;;  %v280_v0 = vlaneseq (!%p203_p3)  ;;  %v677_v2 = vmov (!%p203_p3), 0.0   ;;  %vm292_vm1 = vcmask (!%p203_p3), 1043456   ;;  %vm434_vm4 = vcmask (!%p203_p3), 1040384  }
   0x7   : > { %206 = sbr.rel (%p203_p3) target bundleno = 250 (0xfa), region = 28  ;;  %vm451_vm5 = vcmask (!%p203_p3), 3072   ;;  %vm440_vm6 = vcmask (!%p203_p3), 0  }
   0x8   : > { %vm724_vm0 = vcmp.lt.s32.totalorder (!%p203_p3), %v280_v0, 256  ;;  %v735_v4 = vshrl.u32 (!%p203_p3), %v280_v0, 7  ;;  %v678_v0 = vmov (!%p203_p3), 1966171168  }
   0x9   : > { %284 = vst.msk [vmem:[#allocation2] sm:$0x3] (!%p203_p3), %vm724_vm0, %v677_v2 }
   0xa   : > { %v342_v11 = vsub.s32 (!%p203_p3), 0, %v735_v4  ;;  %v346_v12 = vsub.s32 (!%p203_p3), 1, %v735_v4 }
   0xe   : > { %s802_s15 = smov (!%p247_p4, %s667_s15), 1 }
   0xf   : > { %s615_s19 = sshll.u32 %s802_s15, 3  ;;  %s608_s23 = sshll.u32 %s802_s15, 1 }
  0x10   : > { %s254_s22 = scalar_lea.vmem %s790_s0, %s615_s19  ;;  %s263_s26 = scalar_lea.vmem %s791_s1, %s608_s23 }
  0x11   : > { %v287_v3 = vld [vmem:[%s254_s22] sm:$0xff]  ;;  %s609_s27 = sshll.u32 %s802_s15, 2  ;;  %s267_s7 = scalar_lea.vmem %s792_s2, %s802_s15 }
  0x12   : > { %v290_v5 = vcombine.high %v287_v3, %v287_v3  ;;  %v293_v6 = vsel %vm292_vm1, %v287_v3, -inf  ;;  %v288_v13 = vld [vmem:[%s263_s26] sm:$0x3]  ;;  %s275_s30 = scalar_lea.vmem %s794_s4, %s609_s27  ;;  %s271_s10 = scalar_lea.vmem %s793_s3, %s609_s27 }
  0x13   : > { %v294_v7 = vrot.slane %v293_v6, 4  ;;  %v343_v18 = vrot.slane %v288_v13, %v342_v11  ;;  %v347_v19 = vrot.slane %v288_v13, %v346_v12 }
  0x14   : > { %v300_v8 = vsel %vm292_vm1, %v290_v5, -inf }
  0x15   : > { %v295_v9 = vmax.f32 %v293_v6, %v294_v7  ;;  %v301_v10 = vrot.slane %v300_v8, 4  ;;  %vm348_vm2 = vcmp.eq.s32.totalorder %v735_v4, %v343_v18  ;;  %vm349_vm3 = vcmp.eq.s32.totalorder %v735_v4, %v347_v19 }
  0x16   : > { %v611_v25 = vsel %vm348_vm2, 1.0, %v677_v2  ;;  %v612_v26 = vsel %vm349_vm3, 1.0, %v677_v2  ;;  %v391_v2 = vunpack.c.l.s4 %v678_v0 }
  0x17   : > { %v296_v14 = vrot.slane %v295_v9, 2  ;;  %v302_v15 = vmax.f32 %v300_v8, %v301_v10  ;;  %v750_v29 = vcombine.low %v611_v25, %v612_v26  ;;  %v386_v26 = vld [vmem:[#allocation2] sm:$0x3] }
  0x19   : > { %v297_v16 = vmax.f32 %v295_v9, %v296_v14  ;;  %v303_v17 = vrot.slane %v302_v15, 2  ;;  %v358_v31 = vmul.f32 %v750_v29, %v287_v3  ;;  %v392_v14 = vunpack.c.0.s8 %v391_v2 }
  0x1b   : > { %v298_v20 = vrot.slane %v297_v16, 1  ;;  %v304_v21 = vmax.f32 %v302_v15, %v303_v17  ;;  %v360_v32 = vcombine.high %v358_v31, %v358_v31  ;;  %v362_v33 = vsel %vm292_vm1, %v358_v31, 0.0 }
  0x1c   : > { %v363_v35 = vrot.slane %v362_v33, 4 }
  0x1d   : > { %v299_v22 = vmax.f32 %v297_v16, %v298_v20  ;;  %v305_v23 = vrot.slane %v304_v21, 1  ;;  %v369_v34 = vsel %vm292_vm1, %v360_v32, 0.0  ;;  %v395_v20 = vsub.s32 %v392_v14, %v735_v4 }
  0x1e   : > { %v370_v39 = vrot.slane %v369_v34, 4  ;;  %v364_v42 = vadd.f32 %v363_v35, %v362_v33 }
  0x1f   : > { %v306_v24 = vmax.f32 %v304_v21, %v305_v23 }
  0x20   : > { %v371_v45 = vadd.f32 %v370_v39, %v369_v34  ;;  %v365_v48 = vrot.slane %v364_v42, 2 }
  0x21   : > { %v309_v27 = vcombine.low %v299_v22, %v306_v24 }
  0x22   : > { %v372_v51 = vrot.slane %v371_v45, 2  ;;  %v366_v54 = vadd.f32 %v365_v48, %v364_v42 }
  0x23   : > { %v311_v28 = vsub.f32 %v287_v3, %v309_v27 }
  0x24   : > { %v373_v57 = vadd.f32 %v372_v51, %v371_v45  ;;  %v367_v59 = vrot.slane %v366_v54, 1 }
  0x25   : > { %v312_v30 = vmul.f32 1.442695, %v311_v28 }
  0x26   : > { %v374_v60 = vrot.slane %v373_v57, 1  ;;  %v368_v61 = vadd.f32 %v367_v59, %v366_v54 }
  0x27   : > { %643 = vpow2.f32 %v312_v30 }
  0x28   : > { %v375_v62 = vadd.f32 %v374_v60, %v373_v57  ;;  %v376_v63 = vsub.f32 %v368_v61, %v299_v22 }
  0x2a   : > { %v377_v6 = vsub.f32 %v375_v62, %v306_v24 }
  0x31   : > { %v644_v36 = vpop.eup %643 }
  0x32   : > { %v315_v37 = vcombine.high %v644_v36, %v644_v36  ;;  %v317_v38 = vsel %vm292_vm1, %v644_v36, 0.0 }
  0x33   : > { %v318_v40 = vrot.slane %v317_v38, 4 }
  0x34   : > { %v324_v41 = vsel %vm292_vm1, %v315_v37, 0.0 }
  0x35   : > { %v319_v43 = vadd.f32 %v318_v40, %v317_v38  ;;  %v325_v44 = vrot.slane %v324_v41, 4 }
  0x37   : > { %v320_v46 = vrot.slane %v319_v43, 2  ;;  %v326_v47 = vadd.f32 %v325_v44, %v324_v41 }
  0x39   : > { %v321_v49 = vadd.f32 %v320_v46, %v319_v43  ;;  %v327_v50 = vrot.slane %v326_v47, 2 }
  0x3b   : > { %v322_v52 = vrot.slane %v321_v49, 1  ;;  %v328_v53 = vadd.f32 %v327_v50, %v326_v47 }
  0x3d   : > { %v323_v55 = vadd.f32 %v322_v52, %v321_v49  ;;  %v329_v56 = vrot.slane %v328_v53, 1 }
  0x3f   : > { %v330_v58 = vadd.f32 %v329_v56, %v328_v53  ;;  %645 = vlog2.f32 %v323_v55 }
  0x40   : > { %647 = vrcp.f32 %v323_v55 }
  0x41   : > { %649 = vlog2.f32 %v330_v58 }
  0x42   : > { %651 = vrcp.f32 %v330_v58 }
  0x49   : > { %v646_v3 = vpop.eup %645 }
  0x4a   : > { %v648_v5 = vpop.eup %647  ;;  %v379_v7 = vmul.f32 0.6931472, %v646_v3 }
  0x4b   : > { %v650_v8 = vpop.eup %649 }
  0x4c   : > { %v652_v9 = vpop.eup %651  ;;  %v381_v10 = vmul.f32 0.6931472, %v650_v8  ;;  %v382_v13 = vsub.f32 %v376_v63, %v379_v7 }
  0x4d   : > { %v335_v15 = vcombine.low %v648_v5, %v652_v9 }
  0x4e   : > { %v383_v16 = vsub.f32 %v377_v6, %v381_v10  ;;  %v384_v17 = vsub.f32 0.0, %v382_v13 }
  0x4f   : > { %v337_v18 = vmul.f32 %v644_v36, %v335_v15 }
  0x50   : > { %v385_v19 = vsub.f32 0.0, %v383_v16 }
  0x51   : > { %v417_v21 = vadd.f32 %v750_v29, %v337_v18  ;;  %v412_v32 = vmul.f32 %v750_v29, %v337_v18 }
  0x52   : > { %v389_v22 = vcombine.low %v384_v17, %v385_v19 }
  0x53   : > { %v455_v23 = vcombine.high %v417_v21, %v417_v21  ;;  %v457_v25 = vsel %vm292_vm1, %v417_v21, 0.0  ;;  %v444_v33 = vcombine.high %v412_v32, %v412_v32  ;;  %v446_v39 = vsel %vm292_vm1, %v412_v32, 0.0 }
  0x54   : > { %v396_v24 = vrot.slane %v389_v22, %v395_v20 }
  0x55   : > { %v458_v27 = vsel %vm292_vm1, %v455_v23, 0.0  ;;  %v447_v1 = vsel %vm292_vm1, %v444_v33, 0.0 }
  0x56   : > { %v403_v28 = vrot.slane %v396_v24, %v395_v20  ;;  %v459_v30 = vadd.f32 %v458_v27, %v457_v25  ;;  %v448_v41 = vadd.f32 %v447_v1, %v446_v39 }
  0x58   : > { %v405_v31 = vadd.f32 %v403_v28, %v386_v26  ;;  %460 = vadd.xlane.f32.xlu1 %v459_v30 }
  0x5a   : > { %410 = vst.msk [vmem:[#allocation2] sm:$0x3] %vm724_vm0, %v405_v31 }
  0x61   : > { %v422_v34 = vld [vmem:[#allocation2] sm:$0x3] }
  0x62   : > { %v427_v35 = vrot.slane %v422_v34, %v342_v11  ;;  %v431_v36 = vrot.slane %v422_v34, %v346_v12 }
  0x64   : > { %v435_v37 = vsel %vm434_vm4, %v427_v35, 0.0  ;;  %v436_v38 = vsel %vm434_vm4, %v431_v36, 0.0 }
  0x65   : > { %v437_v40 = vadd.f32 %v436_v38, %v435_v37 }
  0x67   : > { %438 = vadd.xlane.f32.xlu0 %v437_v40 }
  0x6b   : > { %449 = vadd.xlane.f32.xlu0 %v448_v41 }
  0xe5   : > { %v461_v11 = vpop.xlane.xlu1 %460 }
  0xe6   : > { %462 = vst.msk [vmem:[%s275_s30] sm:$0xf] %vm451_vm5, %v461_v11 }
  0xf4   : > { %v439_v4 = vpop.xlane.xlu0 %438 }
  0xf5   : > { %441 = vst.msk [vmem:[%s267_s7] sm:$0x1] %vm440_vm6, %v439_v4 }
  0xf8   : > { %v450_v12 = vpop.xlane.xlu0 %449 }
  0xf9   : > { %452 = vst.msk [vmem:[%s271_s10] sm:$0xf] %vm451_vm5, %v450_v12 }
  0xfa PF: > { %s15_s17 = sadd.s32 1, %s675_s17   ;;  %s797_s15 = smov %s671_s16 }
  0xfb   : > { %p12_p5 = scmp.ge.s32.totalorder %s15_s17, 4   ;;  %s798_s16 = smov %s800_s18 }
  0xfd   :  { %14 = sbr.rel (!%p12_p5) target bundleno = 2 (0x2), region = 93 }

</bundles_post_ra>
